<compile_context>
chip_gen: v5e
topology: v5e:2x2
jax: 0.10.0
libtpu: 0.0.40
codegen_flags: <defaults>
</compile_context>

<pallas_src>
import functools

import jax
import jax.numpy as jnp
from jax.experimental import pallas as pl
from jax.experimental.pallas import tpu as pltpu


def _round_up(n: int, m: int) -> int:
    return (n + m - 1) // m * m


def _tv_kernel(x_ref, hmask_ref, wmask_ref, out_ref, *,
               w_cols: int, sub_rows: int, num_sub: int,
               tbc: int, bc_total: int, mask_tail: bool):
    """One grid step: tbc image-rows, processed in sub_rows-row chunks."""
    hw = x_ref.shape[1]
    out_ref[...] = jnp.zeros_like(out_ref)

    # Hoist + pre-broadcast the pre-scaled masks once (JAX does not CSE
    # broadcast_in_dim inside the chunk loop).
    hmask = jnp.broadcast_to(hmask_ref[...], (sub_rows, hw))
    wmask = jnp.broadcast_to(wmask_ref[...], (sub_rows, hw))

    row0 = pl.program_id(0) * tbc  # first global image-row of this block

    def chunk(r):
        xv = x_ref[pl.ds(r, sub_rows), :].astype(jnp.float32)
        # np.roll semantics: roll(x, s, axis)[..., j] == x[..., j - s]
        x_left = pltpu.roll(xv, 1, axis=1)        # x[h, w-1] at (h, w)
        x_up = pltpu.roll(xv, w_cols, axis=1)     # x[h-1, w] at (h, w)
        dw = xv - x_left
        dh = xv - x_up
        contrib = dh * dh * hmask + dw * dw * wmask
        if mask_tail:
            # Rows past B*C in the final partial block contain unspecified
            # VMEM data; a select (not a multiply) also kills NaN/Inf garbage.
            gr = row0 + r + jax.lax.broadcasted_iota(jnp.int32, contrib.shape, 0)
            contrib = jnp.where(gr < bc_total, contrib, 0.0)
        out_ref[...] += contrib                   # pure VPU adds, no XLU reduce

    if num_sub <= 8:
        for c in range(num_sub):                  # trace-time unrolled
            chunk(c * sub_rows)
    else:
        def body(c, carry):
            chunk(pl.multiple_of(c * sub_rows, sub_rows))
            return carry
        jax.lax.fori_loop(0, num_sub, body, 0)


def make_tv_loss(tv_loss_weight: float = 1.0, *, block_bytes: int = 4 << 20):
    """Builds a TV-loss function matching PyTorch TVLoss.forward (NCHW input)."""
    weight = float(tv_loss_weight)

    def tv_loss(x):
        B, C, H, W = x.shape
        assert H >= 2 and W >= 2, "TVLoss needs H >= 2 and W >= 2"
        BC, HW = B * C, H * W
        hw_pad = _round_up(HW, 128)
        itemsize = jnp.dtype(x.dtype).itemsize
        row_bytes = hw_pad * itemsize            # bytes actually DMA'd per image

        count_h = float(C * (H - 1) * W)         # PyTorch _tensor_size(x[:, :, 1:, :])
        count_w = float(C * H * (W - 1))         # PyTorch _tensor_size(x[:, :, :, 1:])
        hscale = weight * 2.0 / (count_h * B)
        wscale = weight * 2.0 / (count_w * B)

        # (B, C, H, W) -> (B*C, H*W): free row-major reshape, lane-dense rows.
        x_r = x.reshape(BC, HW)

        # Pre-scaled validity masks over flattened position j = h*W + w.
        j = jnp.arange(HW, dtype=jnp.int32)
        wmask = jnp.where(j % W != 0, wscale, 0.0).astype(jnp.float32)[None, :]
        hmask = jnp.where(j >= W, hscale, 0.0).astype(jnp.float32)[None, :]

        # ---- DMA block sizing (input-dtype bytes, no HBM-side padding) ------
        if BC <= 8:
            tbc = BC                              # block dim == full dim
        else:
            tbc = max(8, (block_bytes // row_bytes) // 8 * 8)
            tbc = min(tbc, (BC // 8) * 8)         # never exceed the array dim
            if BC >= 16:
                # >= 2 grid steps so the "parallel" axis uses both v7x TCs.
                tbc = min(tbc, _round_up(-(-BC // 2), 8))

        # Rows per in-kernel chunk: keep each f32 temporary <= ~8 vregs so the
        # working set stays register-resident while the DMA'd block grows.
        if tbc <= 8:
            sub_rows = tbc
        else:
            sub_rows = max(8, min(tbc, ((32 * 1024) // (hw_pad * 4)) // 8 * 8))
            tbc = (tbc // sub_rows) * sub_rows    # make sub_rows divide tbc
        num_sub = tbc // sub_rows
        num_steps = -(-BC // tbc)
        mask_tail = (BC % tbc) != 0
        # TODO(synk): a single image whose flattened row alone exceeds the VMEM
        # budget needs sub-image H-tiling with a one-row halo; not implemented.

        # ---- explicit VMEM accounting ---------------------------------------
        in_block = tbc * row_bytes                       # double-buffered x2
        out_block = sub_rows * hw_pad * 4                # double-buffered x2
        mask_block = 8 * hw_pad * 4                      # (1, HW) pads to 8 sublanes
        chunk_temps = 10 * sub_rows * hw_pad * 4         # live f32 copies in a chunk
        vmem_est = 2 * in_block + 2 * out_block + 4 * mask_block + chunk_temps
        vmem_limit = min(max(int(vmem_est * 1.5) + (2 << 20), 16 << 20), 48 << 20)

        kernel = functools.partial(
            _tv_kernel, w_cols=W, sub_rows=sub_rows, num_sub=num_sub,
            tbc=tbc, bc_total=BC, mask_tail=mask_tail)

        partials = pl.pallas_call(
            kernel,
            out_shape=jax.ShapeDtypeStruct((num_steps * sub_rows, HW), jnp.float32),
            grid=(num_steps,),
            in_specs=[
                pl.BlockSpec((tbc, HW), lambda i: (i, 0)),   # image chunk
                pl.BlockSpec((1, HW), lambda i: (0, 0)),     # hmask (resident)
                pl.BlockSpec((1, HW), lambda i: (0, 0)),     # wmask (resident)
            ],
            out_specs=pl.BlockSpec((sub_rows, HW), lambda i: (i, 0)),
            compiler_params=pltpu.CompilerParams(
                dimension_semantics=("parallel",),
                vmem_limit_bytes=vmem_limit,
            ),
        )(x_r, hmask, wmask)

        # Tiny final reduction over the lane-dense per-step partials.
        return jnp.sum(partials)

    return tv_loss


def tv_loss_reference(x, tv_loss_weight: float = 1.0):
    """Plain-JAX reference reproducing the PyTorch forward exactly."""
    B, C, H, W = x.shape
    count_h = C * (H - 1) * W
    count_w = C * H * (W - 1)
    xf = x.astype(jnp.float32)
    h_tv = jnp.sum((xf[:, :, 1:, :] - xf[:, :, : H - 1, :]) ** 2)
    w_tv = jnp.sum((xf[:, :, :, 1:] - xf[:, :, :, : W - 1]) ** 2)
    return tv_loss_weight * 2.0 * (h_tv / count_h + w_tv / count_w) / B


if __name__ == "__main__":
    keys = jax.random.split(jax.random.PRNGKey(0), 3)

    # 1) Canonical NCHW shape (B=2, C=4, 16x16): single grid step, no tail mask.
    x1 = jax.random.normal(keys[0], (2, 4, 16, 16), dtype=jnp.float32)
    tv1 = jax.jit(make_tv_loss(1.0))
    out1 = jax.block_until_ready(tv1(x1))
    ref1 = jax.block_until_ready(tv_loss_reference(x1, 1.0))
    assert jnp.allclose(out1, ref1, rtol=1e-5, atol=1e-6), (out1, ref1)

    # 2) Ragged tail (B*C = 15) + tiny block budget: multi-step grid with
    #    in-kernel row masking (no HBM-side padding of x).
    x2 = jax.random.normal(keys[1], (3, 5, 16, 24), dtype=jnp.float32)
    tv2 = jax.jit(make_tv_loss(0.5, block_bytes=4096))
    out2 = jax.block_until_ready(tv2(x2))
    ref2 = jax.block_until_ready(tv_loss_reference(x2, 0.5))
    assert jnp.allclose(out2, ref2, rtol=1e-5, atol=1e-6), (out2, ref2)

    # 3) bf16 input, B*C = 32: forced >= 2 grid steps (v7x megacore split) and
    #    an in-kernel multi-chunk walk (num_sub > 1).
    x3 = jax.random.normal(keys[2], (4, 8, 32, 32), dtype=jnp.float32).astype(jnp.bfloat16)
    tv3 = jax.jit(make_tv_loss(1.0))
    out3 = jax.block_until_ready(tv3(x3))
    ref3 = jax.block_until_ready(tv_loss_reference(x3, 1.0))
    assert jnp.allclose(out3, ref3, rtol=1e-4, atol=1e-6), (out3, ref3)

    print("KERNEL_OK")
</pallas_src>

<mosaic_0001>
module attributes {stable_mosaic.version = 11 : i64} {
  func.func @_tv_kernel(%arg0: i32, %arg1: memref<8x256xf32, #tpu.memory_space<vmem>>, %arg2: memref<1x256xf32, #tpu.memory_space<vmem>>, %arg3: memref<1x256xf32, #tpu.memory_space<vmem>>, %arg4: memref<8x256xf32, #tpu.memory_space<vmem>>) attributes {dimension_semantics = [#tpu.dimension_semantics<parallel>], iteration_bounds = array<i64: 1>, scalar_prefetch = 0 : i64, scratch_operands = 0 : i64, tpu.core_type = #tpu.core_type<tc>, window_params = [{transform_indices = @transform_0, window_bounds = array<i64: 8, 256>}, {pipeline_mode = #tpu.pipeline_mode<synchronous>, transform_indices = @transform_1, window_bounds = array<i64: 1, 256>}, {pipeline_mode = #tpu.pipeline_mode<synchronous>, transform_indices = @transform_2, window_bounds = array<i64: 1, 256>}, {transform_indices = @transform_3, window_bounds = array<i64: 8, 256>}]} {
    %cst = arith.constant 0.000000e+00 : f32
    %0 = vector.broadcast %cst : f32 to vector<8x256xf32>
    %c0 = arith.constant 0 : index
    %c0_0 = arith.constant 0 : index
    %1 = vector.load %arg4[%c0, %c0_0] : memref<8x256xf32, #tpu.memory_space<vmem>>, vector<8x256xf32>
    tpu.vector_store %arg4[%c0, %c0_0], %0 {strides = array<i32>} : memref<8x256xf32, #tpu.memory_space<vmem>>, vector<8x256xf32>,
    %c0_1 = arith.constant 0 : index
    %c0_2 = arith.constant 0 : index
    %2 = vector.load %arg2[%c0_1, %c0_2] : memref<1x256xf32, #tpu.memory_space<vmem>>, vector<1x256xf32>
    %3 = vector.shape_cast %2 : vector<1x256xf32> to vector<1x256xf32>
    %4 = vector.broadcast %3 : vector<1x256xf32> to vector<8x256xf32>
    %c0_3 = arith.constant 0 : index
    %c0_4 = arith.constant 0 : index
    %5 = vector.load %arg3[%c0_3, %c0_4] : memref<1x256xf32, #tpu.memory_space<vmem>>, vector<1x256xf32>
    %6 = vector.shape_cast %5 : vector<1x256xf32> to vector<1x256xf32>
    %7 = vector.broadcast %6 : vector<1x256xf32> to vector<8x256xf32>
    %c0_5 = arith.constant 0 : index
    %c0_6 = arith.constant 0 : index
    %8 = vector.load %arg1[%c0_5, %c0_6] : memref<8x256xf32, #tpu.memory_space<vmem>>, vector<8x256xf32>
    %c1_i32 = arith.constant 1 : i32
    %9 = tpu.dynamic_rotate %8 by %c1_i32 dim 1 : vector<8x256xf32>, i32 -> vector<8x256xf32>
    %c16_i32 = arith.constant 16 : i32
    %10 = tpu.dynamic_rotate %8 by %c16_i32 dim 1 : vector<8x256xf32>, i32 -> vector<8x256xf32>
    %11 = arith.subf %8, %9 : vector<8x256xf32>
    %12 = arith.subf %8, %10 : vector<8x256xf32>
    %13 = arith.mulf %12, %12 : vector<8x256xf32>
    %14 = arith.mulf %13, %4 : vector<8x256xf32>
    %15 = arith.mulf %11, %11 : vector<8x256xf32>
    %16 = arith.mulf %15, %7 : vector<8x256xf32>
    %17 = arith.addf %14, %16 : vector<8x256xf32>
    %c0_7 = arith.constant 0 : index
    %c0_8 = arith.constant 0 : index
    %18 = vector.load %arg4[%c0_7, %c0_8] : memref<8x256xf32, #tpu.memory_space<vmem>>, vector<8x256xf32>
    %19 = arith.addf %18, %17 : vector<8x256xf32>
    %c0_9 = arith.constant 0 : index
    %c0_10 = arith.constant 0 : index
    %20 = vector.load %arg4[%c0_9, %c0_10] : memref<8x256xf32, #tpu.memory_space<vmem>>, vector<8x256xf32>
    tpu.vector_store %arg4[%c0_9, %c0_10], %19 {strides = array<i32>} : memref<8x256xf32, #tpu.memory_space<vmem>>, vector<8x256xf32>,
    return
  }
  func.func @transform_0(%arg0: i32) -> (i32, i32) {
    %c0_i32 = arith.constant 0 : i32
    %c0_i32_0 = arith.constant 0 : i32
    return %arg0, %c0_i32 : i32, i32
  }
  func.func @transform_1(%arg0: i32) -> (i32, i32) {
    %c0_i32 = arith.constant 0 : i32
    %c0_i32_0 = arith.constant 0 : i32
    %c0_i32_1 = arith.constant 0 : i32
    return %c0_i32, %c0_i32_0 : i32, i32
  }
  func.func @transform_2(%arg0: i32) -> (i32, i32) {
    %c0_i32 = arith.constant 0 : i32
    %c0_i32_0 = arith.constant 0 : i32
    %c0_i32_1 = arith.constant 0 : i32
    return %c0_i32, %c0_i32_0 : i32, i32
  }
  func.func @transform_3(%arg0: i32) -> (i32, i32) {
    %c0_i32 = arith.constant 0 : i32
    %c0_i32_0 = arith.constant 0 : i32
    return %arg0, %c0_i32 : i32, i32
  }
}

</mosaic_0001>

<bundles_post_ra>
// kernel: tv_loss.1
= control target key start
LH: loop header
LB: loop body
LE: loop exit
PB: predicated region body
PF: predicated region fallthrough
CT: control target
= control target key end

     0   :  { %s73_s14 = smov 16   ;;  %s74_s15 = smov 1   ;;  %v34_v2 = vlaneseq  ;;  %s113_s0 = inlined_call_operand.vmem [shape: f32[8,256], index: 0, kind: input, shape index: {}]   ;;  %s114_s1 = inlined_call_operand.vmem [shape: f32[1,256], index: 1, kind: input, shape index: {}]   ;;  %s115_s2 = inlined_call_operand.vmem [shape: f32[1,256], index: 2, kind: input, shape index: {}]   ;;  %s116_s3 = inlined_call_operand.vmem [shape: f32[8,256], index: 3, kind: output, shape index: {}]  }
   0x1   :  { %v28_v0 = vld [vmem:[%s113_s0] sm:$0xff]  ;;  %v29_v1 = vld [vmem:[%s113_s0 + $0x8] sm:$0xff] }
   0x2   :  { %39 = vrot.lane.b32.xlu1 %v28_v0, %s73_s14  ;;  %30 = vrot.lane.b32.xlu0 %v28_v0, %s74_s15  ;;  %v35_v5 = vand.u32 127, %v34_v2  ;;  %v16_v6 = vld [vmem:[%s114_s1] sm:$0x3] }
   0x3   :  { %v22_v7 = vld [vmem:[%s115_s2] sm:$0x3]  ;;  %v18_v8 = vperm.slane %v16_v6, 0  ;;  %v19_v9 = vperm.slane %v16_v6, 1 }
   0x4   :  { %vm43_vm0 = vcmp.lt.s32.totalorder %v35_v5, 16  ;;  %vm36_vm1 = vcmp.lt.s32.totalorder %v35_v5, 1  ;;  %v24_v11 = vperm.slane %v22_v7, 0  ;;  %v25_v12 = vperm.slane %v22_v7, 1 }
   0xa   :  { %41 = vrot.lane.b32.xlu1 %v29_v1, %s73_s14  ;;  %32 = vrot.lane.b32.xlu0 %v29_v1, %s74_s15 }
  0x74   :  { %v40_v3 = vpop.permute.xlu1 %39  ;;  %v31_v4 = vpop.permute.xlu0 %30 }
  0x7c   :  { %v42_v10 = vpop.permute.xlu1 %41  ;;  %v33_v13 = vpop.permute.xlu0 %32 }
  0x7d   :  { %v44_v14 = vsel %vm43_vm0, %v40_v3, %v42_v10  ;;  %v45_v15 = vsel %vm43_vm0, %v42_v10, %v40_v3  ;;  %v37_v16 = vsel %vm36_vm1, %v31_v4, %v33_v13  ;;  %v38_v17 = vsel %vm36_vm1, %v33_v13, %v31_v4 }
  0x7e   :  { %v48_v18 = vsub.f32 %v28_v0, %v45_v15  ;;  %v49_v19 = vsub.f32 %v29_v1, %v44_v14  ;;  %v46_v20 = vsub.f32 %v28_v0, %v38_v17  ;;  %v47_v21 = vsub.f32 %v29_v1, %v37_v16 }
  0x80   :  { %v50_v22 = vmul.f32 %v48_v18, %v48_v18  ;;  %v51_v23 = vmul.f32 %v49_v19, %v49_v19  ;;  %v54_v24 = vmul.f32 %v46_v20, %v46_v20  ;;  %v55_v25 = vmul.f32 %v47_v21, %v47_v21 }
  0x82   :  { %v52_v26 = vmul.f32 %v50_v22, %v18_v8  ;;  %v53_v27 = vmul.f32 %v51_v23, %v19_v9  ;;  %v56_v28 = vmul.f32 %v54_v24, %v24_v11  ;;  %v57_v29 = vmul.f32 %v55_v25, %v25_v12 }
  0x84   :  { %v58_v30 = vadd.f32 %v56_v28, %v52_v26  ;;  %v59_v31 = vadd.f32 %v57_v29, %v53_v27 }
  0x86   :  { %64 = vst [vmem:[%s116_s3] sm:$0xff] %v58_v30 }
  0x87   :  { %65 = vst [vmem:[%s116_s3 + $0x8] sm:$0xff] %v59_v31 }

</bundles_post_ra>
